<compile_context>
chip_gen: v7x
topology: tpu7x:2x2x1
jax: 0.10.0
libtpu: 0.0.40
codegen_flags: <defaults>
</compile_context>

<pallas_src>
import math

import jax
import jax.numpy as jnp
import numpy as np
from jax.experimental import pallas as pl
from jax.experimental.pallas import tpu as pltpu


# ---------------------------------------------------------------------------
# Fused kernel. Grid = (batch, token_tile).
#   refs: frameworks (scalar prefetch, SMEM), layer weights (SMEM),
#         hidden (L,tT,D) bf16, gamma (1,D), beta (1,D), padded indices (1,tT),
#         qg_weight (F,D,WD) bf16, qg_bias (F,1,WD)
#      -> enc_out (S,D), queries (S,WD); scratch acc (S,D) f32
# ---------------------------------------------------------------------------
def encoder_fused_kernel(fw_ref, lw_ref, h_ref, g_ref, beta_ref, idx_ref,
                         w_ref, qb_ref, enc_out_ref, dec_ref, acc_ref):
    L, tT, D = h_ref.shape
    n_words = enc_out_ref.shape[0]
    b = pl.program_id(0)
    t = pl.program_id(1)
    nT = pl.num_programs(1)

    @pl.when(t == 0)
    def _():
        acc_ref[...] = jnp.zeros_like(acc_ref)

    # 1) per-layer LayerNorm (f32 stats) + softmax-weighted layer mix.
    #    gamma/beta applied once after the loop (softmax weights sum to 1),
    #    the layer weight is folded into the per-row inv_std scalar.
    def ln_layer(l, acc):
        h = h_ref[l].astype(jnp.float32)                       # (tT, D)
        mean = jnp.mean(h, axis=-1, keepdims=True)
        var = jnp.mean((h - mean) ** 2, axis=-1, keepdims=True)
        scale = lw_ref[l] * jax.lax.rsqrt(var + 1e-5)          # (tT, 1)
        return acc + (h - mean) * scale

    mixed = jax.lax.fori_loop(0, L, ln_layer,
                              jnp.zeros((tT, D), jnp.float32), unroll=True)
    encoded = mixed * g_ref[...] + beta_ref[...]               # (tT, D) f32

    # 2) CLS/SEP drop + scatter_add + dummy-slot drop as one one-hot matmul.
    #    Padded/dummy indices equal n_words and never match a row < n_words.
    idx = idx_ref[...]                                         # (1, tT) int32
    rows = jax.lax.broadcasted_iota(jnp.int32, (n_words, tT), 0)
    onehot = (rows == idx).astype(jnp.bfloat16)                # exact in bf16
    acc_ref[...] += jnp.dot(onehot, encoded.astype(jnp.bfloat16),
                            preferred_element_type=jnp.float32)

    # 3) last token tile: write encoder output and run QueryGenerator.
    @pl.when(t == nT - 1)
    def _():
        enc_out = acc_ref[...]                                 # (S, D) f32
        enc_out_ref[...] = enc_out
        fw = fw_ref[b]                                         # scalar SMEM read
        q = jnp.dot(enc_out.astype(jnp.bfloat16), w_ref[fw],   # bf16 MXU, f32 acc
                    preferred_element_type=jnp.float32)
        dec_ref[...] = jnp.tanh(q + qb_ref[fw])


def encoder_forward(params, hidden_states, to_scatter, n_words, frameworks,
                    width_factor, *, token_tile=None):
    """hidden_states: [B, L, T, D] (batch-major; bf16 or f32)."""
    B, L, T, D = hidden_states.shape
    Tm = to_scatter.shape[1]
    assert Tm == T - 2
    F_, Dw, WD = params["qg_weight"].shape
    assert Dw == D and WD == width_factor * D

    # Token tiling (v7x VMEM budget): tT == T (single tile) or a multiple of
    # 128 dividing T for real BERT sequence lengths.
    if token_tile is None or token_tile >= T:
        tT = T
    else:
        assert T % token_tile == 0 and token_tile % 128 == 0, (
            "token_tile must divide T and be a multiple of 128")
        tT = token_tile
    nT = T // tT

    hidden_bf16 = hidden_states.astype(jnp.bfloat16)
    layer_w = jax.nn.softmax(params["scores"].reshape(L)).astype(jnp.float32)
    qg_w = params["qg_weight"].astype(jnp.bfloat16)            # (F, D, WD)
    qg_b = params["qg_bias"].reshape(F_, 1, WD).astype(jnp.float32)

    # Pad to_scatter to length T with the sentinel word slot n_words so the
    # CLS (pos 0) and SEP (pos T-1) columns of the one-hot are all-zero.
    # NOTE: to_scatter values must lie in [0, n_words].
    sentinel = jnp.full((B, 1), n_words, dtype=jnp.int32)
    idx_padded = jnp.concatenate(
        [sentinel, to_scatter.astype(jnp.int32), sentinel], axis=1)  # (B, T)
    idx3 = idx_padded.reshape(B, 1, T)
    frameworks = frameworks.astype(jnp.int32)

    enc_out, queries = pl.pallas_call(
        encoder_fused_kernel,
        out_shape=(
            jax.ShapeDtypeStruct((B, n_words, D), jnp.float32),
            jax.ShapeDtypeStruct((B, n_words, WD), jnp.float32),
        ),
        grid_spec=pltpu.PrefetchScalarGridSpec(
            num_scalar_prefetch=1,                    # frameworks -> SMEM
            grid=(B, nT),
            in_specs=[
                pl.BlockSpec(memory_space=pltpu.MemorySpace.SMEM),        # layer_w (L,)
                pl.BlockSpec((None, L, tT, D), lambda b, t, fw: (b, 0, t, 0)),  # hidden
                pl.BlockSpec((1, D), lambda b, t, fw: (0, 0)),                  # gamma
                pl.BlockSpec((1, D), lambda b, t, fw: (0, 0)),                  # beta
                pl.BlockSpec((None, 1, tT), lambda b, t, fw: (b, 0, t)),        # indices
                pl.BlockSpec((F_, D, WD), lambda b, t, fw: (0, 0, 0)),          # qg weight
                pl.BlockSpec((F_, 1, WD), lambda b, t, fw: (0, 0, 0)),          # qg bias
            ],
            out_specs=[
                pl.BlockSpec((None, n_words, D), lambda b, t, fw: (b, 0, 0)),
                pl.BlockSpec((None, n_words, WD), lambda b, t, fw: (b, 0, 0)),
            ],
            scratch_shapes=[pltpu.VMEM((n_words, D), jnp.float32)],
        ),
        compiler_params=pltpu.CompilerParams(
            dimension_semantics=("parallel", "arbitrary"),  # B across TCs on v7x
            vmem_limit_bytes=48 * 1024 * 1024,              # headroom on all gens
        ),
    )(frameworks, layer_w, hidden_bf16, params["ln_gamma"],
      params["ln_beta"], idx3, qg_w, qg_b)

    # view(B, S, width_factor, D).flatten(1, 2) == contiguous reshape:
    decoder_input = queries.reshape(B, n_words * width_factor, D)
    return enc_out, decoder_input


# ---------------------------------------------------------------------------
# Pure-JAX f32 reference (module semantics) for the correctness check.
# ---------------------------------------------------------------------------
def encoder_forward_ref(params, hidden, to_scatter, n_words, frameworks,
                        width_factor):
    B, L, T, D = hidden.shape
    h = hidden.astype(jnp.float32)
    mean = h.mean(-1, keepdims=True)
    var = ((h - mean) ** 2).mean(-1, keepdims=True)
    hn = (h - mean) / jnp.sqrt(var + 1e-5)
    hn = hn * params["ln_gamma"].reshape(D) + params["ln_beta"].reshape(D)
    w = jax.nn.softmax(params["scores"].reshape(L))
    encoded = (w[None, :, None, None] * hn).sum(1)             # (B, T, D)
    src = encoded[:, 1:-1, :]
    out = jnp.zeros((B, n_words + 1, D), jnp.float32)
    out = out.at[jnp.arange(B)[:, None], to_scatter, :].add(src)
    encoder_output = out[:, :-1, :]
    wsel = params["qg_weight"][frameworks]
    bsel = params["qg_bias"][frameworks][:, None, :]
    q = jnp.tanh(jnp.einsum("bsd,bde->bse", encoder_output, wsel) + bsel)
    return encoder_output, q.reshape(B, -1, D)


if __name__ == "__main__":
    # Small shapes consistent with the module:
    L, B, T, D = 2, 2, 10, 32     # n_encoder_layers, batch, BERT tokens, hidden
    W = 2                         # query_length (width_factor)
    n_frameworks = 3
    n_words = 8                   # words per sentence (S)

    key = jax.random.PRNGKey(0)
    k1, k2, k3, k4 = jax.random.split(key, 4)

    # Synthetic stand-in for bert(...)[2][1:] stacked hidden states,
    # batch-major [B, L, T, D], supplied in bf16 (halves the HBM read).
    hidden = jax.random.normal(k1, (B, L, T, D),
                               dtype=jnp.float32).astype(jnp.bfloat16)
    to_scatter = jax.random.randint(k2, (B, T - 2), 0, n_words + 1,
                                    dtype=jnp.int32)
    frameworks = jax.random.randint(k3, (B,), 0, n_frameworks, dtype=jnp.int32)
    # Host-side sanity check (torch index_add would OOB on bad indices):
    assert int(to_scatter.max()) <= n_words and int(to_scatter.min()) >= 0

    # Deterministic parameter init (matching __init__ shapes):
    #   QueryGenerator weight: kaiming_uniform(a=sqrt(5)) bound = 1/sqrt(D),
    #   transposed and repeated over frameworks -> [F, D, W*D].
    bound = 1.0 / math.sqrt(D)
    qg_w0 = jax.random.uniform(k4, (D, W * D), minval=-bound, maxval=bound,
                               dtype=jnp.float32)
    params = {
        "ln_gamma": jnp.ones((1, D), jnp.float32),
        "ln_beta": jnp.zeros((1, D), jnp.float32),
        "scores": jnp.zeros((L, 1, 1, 1), jnp.float32),
        "qg_weight": jnp.tile(qg_w0[None], (n_frameworks, 1, 1)),
        "qg_bias": jnp.zeros((n_frameworks, W * D), jnp.float32),
    }

    enc_out, dec_in = encoder_forward(params, hidden, to_scatter, n_words,
                                      frameworks, W)
    jax.block_until_ready((enc_out, dec_in))

    enc_ref, dec_ref = encoder_forward_ref(params, hidden, to_scatter, n_words,
                                           frameworks, W)
    assert enc_out.shape == (B, n_words, D)
    assert dec_in.shape == (B, n_words * W, D)
    # The kernel feeds the MXU bf16 operands (with f32 accumulation) while the
    # reference is all-f32, so tolerance is loosened to cover ~2^-9 relative
    # rounding of the activations/weights at the two matmuls.
    np.testing.assert_allclose(np.asarray(enc_out), np.asarray(enc_ref),
                               atol=5e-2, rtol=5e-2)
    np.testing.assert_allclose(np.asarray(dec_in), np.asarray(dec_ref),
                               atol=5e-2, rtol=5e-2)
    print("KERNEL_OK")
</pallas_src>

<mosaic_0001>
module attributes {stable_mosaic.version = 11 : i64} {
  func.func @encoder_fused_kernel(%arg0: i32, %arg1: i32, %arg2: memref<2xi32, #tpu.memory_space<smem>>, %arg3: memref<2xf32, #tpu.memory_space<smem>>, %arg4: memref<1x2x10x32xbf16, #tpu.memory_space<vmem>>, %arg5: memref<1x32xf32, #tpu.memory_space<vmem>>, %arg6: memref<1x32xf32, #tpu.memory_space<vmem>>, %arg7: memref<1x1x10xi32, #tpu.memory_space<vmem>>, %arg8: memref<3x32x64xbf16, #tpu.memory_space<vmem>>, %arg9: memref<3x1x64xf32, #tpu.memory_space<vmem>>, %arg10: memref<1x8x32xf32, #tpu.memory_space<vmem>>, %arg11: memref<1x8x64xf32, #tpu.memory_space<vmem>>, %arg12: memref<8x32xf32, #tpu.memory_space<vmem>>) attributes {dimension_semantics = [#tpu.dimension_semantics<parallel>, #tpu.dimension_semantics<arbitrary>], iteration_bounds = array<i64: 2, 1>, scalar_prefetch = 1 : i64, scratch_operands = 1 : i64, tpu.core_type = #tpu.core_type<tc>, window_params = [{transform_indices = @transform_0, window_bounds = array<i64: 2>}, {transform_indices = @transform_1, window_bounds = array<i64: 1, 2, 10, 32>}, {pipeline_mode = #tpu.pipeline_mode<synchronous>, transform_indices = @transform_2, window_bounds = array<i64: 1, 32>}, {pipeline_mode = #tpu.pipeline_mode<synchronous>, transform_indices = @transform_3, window_bounds = array<i64: 1, 32>}, {transform_indices = @transform_4, window_bounds = array<i64: 1, 1, 10>}, {pipeline_mode = #tpu.pipeline_mode<synchronous>, transform_indices = @transform_5, window_bounds = array<i64: 3, 32, 64>}, {pipeline_mode = #tpu.pipeline_mode<synchronous>, transform_indices = @transform_6, window_bounds = array<i64: 3, 1, 64>}, {transform_indices = @transform_7, window_bounds = array<i64: 1, 8, 32>}, {transform_indices = @transform_8, window_bounds = array<i64: 1, 8, 64>}]} {
    %c0_i32 = arith.constant 0 : i32
    %0 = arith.cmpi eq, %arg1, %c0_i32 : i32
    %1 = arith.extui %0 : i1 to i32
    %c0_i32_0 = arith.constant 0 : i32
    %2 = arith.cmpi ne, %1, %c0_i32_0 : i32
    scf.if %2 {
      %cst_31 = arith.constant 0.000000e+00 : f32
      %80 = vector.broadcast %cst_31 : f32 to vector<8x32xf32>
      %c0_32 = arith.constant 0 : index
      %c0_33 = arith.constant 0 : index
      %81 = vector.load %arg12[%c0_32, %c0_33] : memref<8x32xf32, #tpu.memory_space<vmem>>, vector<8x32xf32>
      tpu.vector_store %arg12[%c0_32, %c0_33], %80 {strides = array<i32>} : memref<8x32xf32, #tpu.memory_space<vmem>>, vector<8x32xf32>,
    } else {
    }
    %cst = arith.constant 0.000000e+00 : f32
    %3 = vector.broadcast %cst : f32 to vector<10x32xf32>
    %c0_i32_1 = arith.constant 0 : i32
    %c0 = arith.constant 0 : index
    %4 = arith.index_cast %c0_i32_1 : i32 to index
    %c0_2 = arith.constant 0 : index
    %c0_3 = arith.constant 0 : index
    %5 = vector.load %arg4[%c0, %4, %c0_2, %c0_3] : memref<1x2x10x32xbf16, #tpu.memory_space<vmem>>, vector<1x1x10x32xbf16>
    %6 = vector.shape_cast %5 : vector<1x1x10x32xbf16> to vector<10x32xbf16>
    %7 = arith.extf %6 : vector<10x32xbf16> to vector<10x32xf32>
    %cst_4 = arith.constant dense<0.000000e+00> : vector<10xf32>
    %8 = vector.multi_reduction <add>, %7, %cst_4 [1] : vector<10x32xf32> to vector<10xf32>
    %9 = vector.shape_cast %8 : vector<10xf32> to vector<10x1xf32>
    %cst_5 = arith.constant 3.200000e+01 : f32
    %10 = vector.broadcast %cst_5 : f32 to vector<10x1xf32>
    %11 = arith.divf %9, %10 : vector<10x1xf32>
    %12 = vector.broadcast %11 : vector<10x1xf32> to vector<10x32xf32>
    %13 = arith.subf %7, %12 : vector<10x32xf32>
    %14 = arith.mulf %13, %13 : vector<10x32xf32>
    %cst_6 = arith.constant dense<0.000000e+00> : vector<10xf32>
    %15 = vector.multi_reduction <add>, %14, %cst_6 [1] : vector<10x32xf32> to vector<10xf32>
    %16 = vector.shape_cast %15 : vector<10xf32> to vector<10x1xf32>
    %cst_7 = arith.constant 3.200000e+01 : f32
    %17 = vector.broadcast %cst_7 : f32 to vector<10x1xf32>
    %18 = arith.divf %16, %17 : vector<10x1xf32>
    %19 = arith.index_cast %c0_i32_1 : i32 to index
    %20 = memref.load %arg3[%19] : memref<2xf32, #tpu.memory_space<smem>>
    %cst_8 = arith.constant 9.99999974E-6 : f32
    %21 = vector.broadcast %cst_8 : f32 to vector<10x1xf32>
    %22 = arith.addf %18, %21 : vector<10x1xf32>
    %23 = math.rsqrt %22 : vector<10x1xf32>
    %24 = vector.broadcast %20 : f32 to vector<10x1xf32>
    %25 = arith.mulf %24, %23 : vector<10x1xf32>
    %26 = vector.broadcast %11 : vector<10x1xf32> to vector<10x32xf32>
    %27 = arith.subf %7, %26 : vector<10x32xf32>
    %28 = vector.broadcast %25 : vector<10x1xf32> to vector<10x32xf32>
    %29 = arith.mulf %27, %28 : vector<10x32xf32>
    %30 = arith.addf %3, %29 : vector<10x32xf32>
    %c1_i32 = arith.constant 1 : i32
    %c0_9 = arith.constant 0 : index
    %31 = arith.index_cast %c1_i32 : i32 to index
    %c0_10 = arith.constant 0 : index
    %c0_11 = arith.constant 0 : index
    %32 = vector.load %arg4[%c0_9, %31, %c0_10, %c0_11] : memref<1x2x10x32xbf16, #tpu.memory_space<vmem>>, vector<1x1x10x32xbf16>
    %33 = vector.shape_cast %32 : vector<1x1x10x32xbf16> to vector<10x32xbf16>
    %34 = arith.extf %33 : vector<10x32xbf16> to vector<10x32xf32>
    %cst_12 = arith.constant dense<0.000000e+00> : vector<10xf32>
    %35 = vector.multi_reduction <add>, %34, %cst_12 [1] : vector<10x32xf32> to vector<10xf32>
    %36 = vector.shape_cast %35 : vector<10xf32> to vector<10x1xf32>
    %cst_13 = arith.constant 3.200000e+01 : f32
    %37 = vector.broadcast %cst_13 : f32 to vector<10x1xf32>
    %38 = arith.divf %36, %37 : vector<10x1xf32>
    %39 = vector.broadcast %38 : vector<10x1xf32> to vector<10x32xf32>
    %40 = arith.subf %34, %39 : vector<10x32xf32>
    %41 = arith.mulf %40, %40 : vector<10x32xf32>
    %cst_14 = arith.constant dense<0.000000e+00> : vector<10xf32>
    %42 = vector.multi_reduction <add>, %41, %cst_14 [1] : vector<10x32xf32> to vector<10xf32>
    %43 = vector.shape_cast %42 : vector<10xf32> to vector<10x1xf32>
    %cst_15 = arith.constant 3.200000e+01 : f32
    %44 = vector.broadcast %cst_15 : f32 to vector<10x1xf32>
    %45 = arith.divf %43, %44 : vector<10x1xf32>
    %46 = arith.index_cast %c1_i32 : i32 to index
    %47 = memref.load %arg3[%46] : memref<2xf32, #tpu.memory_space<smem>>
    %cst_16 = arith.constant 9.99999974E-6 : f32
    %48 = vector.broadcast %cst_16 : f32 to vector<10x1xf32>
    %49 = arith.addf %45, %48 : vector<10x1xf32>
    %50 = math.rsqrt %49 : vector<10x1xf32>
    %51 = vector.broadcast %47 : f32 to vector<10x1xf32>
    %52 = arith.mulf %51, %50 : vector<10x1xf32>
    %53 = vector.broadcast %38 : vector<10x1xf32> to vector<10x32xf32>
    %54 = arith.subf %34, %53 : vector<10x32xf32>
    %55 = vector.broadcast %52 : vector<10x1xf32> to vector<10x32xf32>
    %56 = arith.mulf %54, %55 : vector<10x32xf32>
    %57 = arith.addf %30, %56 : vector<10x32xf32>
    %c2_i32 = arith.constant 2 : i32
    %c0_17 = arith.constant 0 : index
    %c0_18 = arith.constant 0 : index
    %58 = vector.load %arg5[%c0_17, %c0_18] : memref<1x32xf32, #tpu.memory_space<vmem>>, vector<1x32xf32>
    %59 = vector.broadcast %58 : vector<1x32xf32> to vector<10x32xf32>
    %60 = arith.mulf %57, %59 : vector<10x32xf32>
    %c0_19 = arith.constant 0 : index
    %c0_20 = arith.constant 0 : index
    %61 = vector.load %arg6[%c0_19, %c0_20] : memref<1x32xf32, #tpu.memory_space<vmem>>, vector<1x32xf32>
    %62 = vector.broadcast %61 : vector<1x32xf32> to vector<10x32xf32>
    %63 = arith.addf %60, %62 : vector<10x32xf32>
    %c0_21 = arith.constant 0 : index
    %c0_22 = arith.constant 0 : index
    %c0_23 = arith.constant 0 : index
    %64 = vector.load %arg7[%c0_21, %c0_22, %c0_23] : memref<1x1x10xi32, #tpu.memory_space<vmem>>, vector<1x1x10xi32>
    %65 = vector.shape_cast %64 : vector<1x1x10xi32> to vector<1x10xi32>
    %66 = tpu.iota {dimensions = array<i32: 0>} : vector<8x10xi32>
    %67 = vector.broadcast %65 : vector<1x10xi32> to vector<8x10xi32>
    %68 = arith.cmpi eq, %66, %67 : vector<8x10xi32>
    %69 = arith.extui %68 : vector<8x10xi1> to vector<8x10xi32>
    %70 = arith.sitofp %69 : vector<8x10xi32> to vector<8x10xf32>
    %71 = arith.truncf %70 : vector<8x10xf32> to vector<8x10xbf16>
    %c0_24 = arith.constant 0 : index
    %c0_25 = arith.constant 0 : index
    %72 = vector.load %arg12[%c0_24, %c0_25] : memref<8x32xf32, #tpu.memory_space<vmem>>, vector<8x32xf32>
    %73 = arith.truncf %63 : vector<10x32xf32> to vector<10x32xbf16>
    %cst_26 = arith.constant dense<0.000000e+00> : vector<8x32xf32>
    %74 = tpu.matmul %71, %73, %cst_26 {dimension_numbers = #tpu.dot_dimension_numbers<[1], [0], [0], [1], [0, 0, 1, 1], [], []>} : vector<8x10xbf16>, vector<10x32xbf16>, vector<8x32xf32> -> vector<8x32xf32>
    %75 = arith.addf %72, %74 : vector<8x32xf32>
    %c0_27 = arith.constant 0 : index
    %c0_28 = arith.constant 0 : index
    %76 = vector.load %arg12[%c0_27, %c0_28] : memref<8x32xf32, #tpu.memory_space<vmem>>, vector<8x32xf32>
    tpu.vector_store %arg12[%c0_27, %c0_28], %75 {strides = array<i32>} : memref<8x32xf32, #tpu.memory_space<vmem>>, vector<8x32xf32>,
    %c0_i32_29 = arith.constant 0 : i32
    %77 = arith.cmpi eq, %arg1, %c0_i32_29 : i32
    %78 = arith.extui %77 : i1 to i32
    %c0_i32_30 = arith.constant 0 : i32
    %79 = arith.cmpi ne, %78, %c0_i32_30 : i32
    scf.if %79 {
      %c0_31 = arith.constant 0 : index
      %c0_32 = arith.constant 0 : index
      %80 = vector.load %arg12[%c0_31, %c0_32] : memref<8x32xf32, #tpu.memory_space<vmem>>, vector<8x32xf32>
      %c0_33 = arith.constant 0 : index
      %c0_34 = arith.constant 0 : index
      %c0_35 = arith.constant 0 : index
      %81 = vector.load %arg10[%c0_33, %c0_34, %c0_35] : memref<1x8x32xf32, #tpu.memory_space<vmem>>, vector<1x8x32xf32>
      %82 = vector.shape_cast %81 : vector<1x8x32xf32> to vector<8x32xf32>
      %83 = vector.shape_cast %80 : vector<8x32xf32> to vector<1x8x32xf32>
      tpu.vector_store %arg10[%c0_33, %c0_34, %c0_35], %83 {strides = array<i32>} : memref<1x8x32xf32, #tpu.memory_space<vmem>>, vector<1x8x32xf32>,
      %84 = arith.index_cast %arg0 : i32 to index
      %85 = memref.load %arg2[%84] : memref<2xi32, #tpu.memory_space<smem>>
      %86 = arith.truncf %80 : vector<8x32xf32> to vector<8x32xbf16>
      %87 = arith.index_cast %85 : i32 to index
      %c0_36 = arith.constant 0 : index
      %c0_37 = arith.constant 0 : index
      %88 = vector.load %arg8[%87, %c0_36, %c0_37] : memref<3x32x64xbf16, #tpu.memory_space<vmem>>, vector<1x32x64xbf16>
      %89 = vector.shape_cast %88 : vector<1x32x64xbf16> to vector<32x64xbf16>
      %cst_38 = arith.constant dense<0.000000e+00> : vector<8x64xf32>
      %90 = tpu.matmul %86, %89, %cst_38 {dimension_numbers = #tpu.dot_dimension_numbers<[1], [0], [0], [1], [0, 0, 1, 1], [], []>} : vector<8x32xbf16>, vector<32x64xbf16>, vector<8x64xf32> -> vector<8x64xf32>
      %91 = arith.index_cast %85 : i32 to index
      %c0_39 = arith.constant 0 : index
      %c0_40 = arith.constant 0 : index
      %92 = vector.load %arg9[%91, %c0_39, %c0_40] : memref<3x1x64xf32, #tpu.memory_space<vmem>>, vector<1x1x64xf32>
      %93 = vector.shape_cast %92 : vector<1x1x64xf32> to vector<1x64xf32>
      %94 = vector.broadcast %93 : vector<1x64xf32> to vector<8x64xf32>
      %95 = arith.addf %90, %94 : vector<8x64xf32>
      %96 = math.tanh %95 : vector<8x64xf32>
      %c0_41 = arith.constant 0 : index
      %c0_42 = arith.constant 0 : index
      %c0_43 = arith.constant 0 : index
      %97 = vector.load %arg11[%c0_41, %c0_42, %c0_43] : memref<1x8x64xf32, #tpu.memory_space<vmem>>, vector<1x8x64xf32>
      %98 = vector.shape_cast %97 : vector<1x8x64xf32> to vector<8x64xf32>
      %99 = vector.shape_cast %96 : vector<8x64xf32> to vector<1x8x64xf32>
      tpu.vector_store %arg11[%c0_41, %c0_42, %c0_43], %99 {strides = array<i32>} : memref<1x8x64xf32, #tpu.memory_space<vmem>>, vector<1x8x64xf32>,
    } else {
    }
    return
  }
  func.func @transform_0(%arg0: i32, %arg1: i32, %arg2: memref<2xi32, #tpu.memory_space<smem>>) -> i32 {
    %c0_i32 = arith.constant 0 : i32
    %c0_i32_0 = arith.constant 0 : i32
    return %c0_i32 : i32
  }
  func.func @transform_1(%arg0: i32, %arg1: i32, %arg2: memref<2xi32, #tpu.memory_space<smem>>) -> (i32, i32, i32, i32) {
    %c0_i32 = arith.constant 0 : i32
    %c0_i32_0 = arith.constant 0 : i32
    %c0_i32_1 = arith.constant 0 : i32
    return %arg0, %c0_i32, %arg1, %c0_i32_0 : i32, i32, i32, i32
  }
  func.func @transform_2(%arg0: i32, %arg1: i32, %arg2: memref<2xi32, #tpu.memory_space<smem>>) -> (i32, i32) {
    %c0_i32 = arith.constant 0 : i32
    %c0_i32_0 = arith.constant 0 : i32
    %c0_i32_1 = arith.constant 0 : i32
    return %c0_i32, %c0_i32_0 : i32, i32
  }
  func.func @transform_3(%arg0: i32, %arg1: i32, %arg2: memref<2xi32, #tpu.memory_space<smem>>) -> (i32, i32) {
    %c0_i32 = arith.constant 0 : i32
    %c0_i32_0 = arith.constant 0 : i32
    %c0_i32_1 = arith.constant 0 : i32
    return %c0_i32, %c0_i32_0 : i32, i32
  }
  func.func @transform_4(%arg0: i32, %arg1: i32, %arg2: memref<2xi32, #tpu.memory_space<smem>>) -> (i32, i32, i32) {
    %c0_i32 = arith.constant 0 : i32
    %c0_i32_0 = arith.constant 0 : i32
    return %arg0, %c0_i32, %arg1 : i32, i32, i32
  }
  func.func @transform_5(%arg0: i32, %arg1: i32, %arg2: memref<2xi32, #tpu.memory_space<smem>>) -> (i32, i32, i32) {
    %c0_i32 = arith.constant 0 : i32
    %c0_i32_0 = arith.constant 0 : i32
    %c0_i32_1 = arith.constant 0 : i32
    %c0_i32_2 = arith.constant 0 : i32
    return %c0_i32, %c0_i32_0, %c0_i32_1 : i32, i32, i32
  }
  func.func @transform_6(%arg0: i32, %arg1: i32, %arg2: memref<2xi32, #tpu.memory_space<smem>>) -> (i32, i32, i32) {
    %c0_i32 = arith.constant 0 : i32
    %c0_i32_0 = arith.constant 0 : i32
    %c0_i32_1 = arith.constant 0 : i32
    %c0_i32_2 = arith.constant 0 : i32
    return %c0_i32, %c0_i32_0, %c0_i32_1 : i32, i32, i32
  }
  func.func @transform_7(%arg0: i32, %arg1: i32, %arg2: memref<2xi32, #tpu.memory_space<smem>>) -> (i32, i32, i32) {
    %c0_i32 = arith.constant 0 : i32
    %c0_i32_0 = arith.constant 0 : i32
    %c0_i32_1 = arith.constant 0 : i32
    return %arg0, %c0_i32, %c0_i32_0 : i32, i32, i32
  }
  func.func @transform_8(%arg0: i32, %arg1: i32, %arg2: memref<2xi32, #tpu.memory_space<smem>>) -> (i32, i32, i32) {
    %c0_i32 = arith.constant 0 : i32
    %c0_i32_0 = arith.constant 0 : i32
    %c0_i32_1 = arith.constant 0 : i32
    return %arg0, %c0_i32, %c0_i32_0 : i32, i32, i32
  }
}

</mosaic_0001>

<bundles_post_ra>
// kernel: tpu_custom_call.1
= control target key start
LH: loop header
LB: loop body
LE: loop exit
PB: predicated region body
PF: predicated region fallthrough
CT: control target
= control target key end

     0   :  { %s1350_s0 = inlined_call_operand.vmem [shape: s32[2], index: 0, kind: input, shape index: {}]   ;;  %s1351_s1 = inlined_call_operand.vmem [shape: f32[2], index: 1, kind: input, shape index: {}]   ;;  %s1352_s2 = inlined_call_operand.vmem [shape: bf16[2,2,10,32], index: 2, kind: input, shape index: {}]   ;;  %s1353_s3 = inlined_call_operand.vmem [shape: f32[1,32], index: 3, kind: input, shape index: {}]   ;;  %s1354_s4 = inlined_call_operand.vmem [shape: f32[1,32], index: 4, kind: input, shape index: {}]   ;;  %s1355_s5 = inlined_call_operand.vmem [shape: s32[2,1,10], index: 5, kind: input, shape index: {}]   ;;  %s1356_s6 = inlined_call_operand.vmem [shape: bf16[3,32,64], index: 6, kind: input, shape index: {}]   ;;  %s1357_s7 = inlined_call_operand.vmem [shape: f32[3,1,64], index: 7, kind: input, shape index: {}]   ;;  %s1358_s8 = inlined_call_operand.hbm [shape: f32[2,8,32], index: 8, kind: output, shape index: {0}]   ;;  %s1359_s9 = inlined_call_operand.hbm [shape: f32[2,8,64], index: 9, kind: output, shape index: {1}]  }
   0x1   :  { %1362 = sst [smem:[#allocation15_spill]] %s1351_s1  ;;  %s15_s11 = sshll.u32 %s1350_s0, 4  ;;  %s16_s11 = int_to_ptr.vmem [resolvable:$true] %s15_s11 }
   0x2   :  { %s935_s12 = scalar_lea.vmem %s16_s11, 16  ;;  %p940_p1 = scmp.lt.s32.totalorder %s16_s11, %s16_s11 }
   0x3   :  { %p936_p0 = scmp.ne.s32.totalorder %s16_s11, %s935_s12  ;;  %p941_p2 = scmp.lt.s32.totalorder %s935_s12, %s935_s12 }
   0x5   :  { %p942_p3 = por %p941_p2, %p940_p1 }
   0x7   :  { %p943_p4 = pnand %p942_p3, %p936_p0 }
   0x9   :  { %946 = shalt.err (!%p943_p4)  }
   0xa   :  { %s1080_s13 = smov [#allocation4]  }
   0xb   :  { %18 = dma.vmem_to_smem %s16_s11, 16, %s1080_s13, [#allocation3] }
   0xc   :  { %1042 = dma.done.wait [#allocation3], 16 }
   0xd   :  { %1043 = vsyncadd [#allocation3], 4294967280 }
   0xe   :  { %20 = sfence }
   0xf   :  { %21 = vsyncpa [#allocation7], 0 }
  0x10   :  { %22 = vsyncpa [#allocation6], 0 }
  0x11   :  { %24 = vsyncpa [#allocation6 + $0x1], 0 }
  0x12   :  { %25 = vsyncpa [#allocation10], 0 }
  0x13   :  { %27 = vsyncpa [#allocation10 + $0x1], 0  ;;  %s1139_s14 = smov 0   ;;  %s1141_s0 = smov 0  }
  0x14   :  { %s1143_s15 = smov 0   ;;  %s1145_s16 = smov 0  }
  0x15   :  { %s1147_s17 = smov 0   ;;  %s1149_s18 = smov 0  }
  0x16 LB: > { %s797_s19 = sadd.s32 4294967295, %s1078_s18   ;;  %s798_s20 = sadd.s32 4294967294, %s1078_s18   ;;  %s1078_s18 = sphi %s1149_s18, %s33_s18   ;;  %s1074_s17 = sphi %s1147_s17, %s1374_s17   ;;  %s1070_s16 = sphi %s1145_s16, %s1373_s16   ;;  %s1066_s15 = sphi %s1143_s15, %s1372_s15   ;;  %s1062_s0 = sphi %s1141_s0, %s1371_s0   ;;  %s1058_s14 = sphi %s1139_s14, %s1370_s14  }
  0x17   : > { %s45_s21 = sadd.s32 1, %s1074_s17  ;;  %s213_s22 = sadd.s32 1, %s1066_s15 }
  0x18   : > { %p47_p5 = scmp.ge.s32.totalorder %s45_s21, 2  ;;  %p223_p6 = scmp.ne.s32.totalorder %s1066_s15, %s1062_s0 }
  0x19   : > { %p224_p7 = scmp.eq.s32.totalorder %s797_s19, 1  ;;  %p229_p8 = scmp.ne.s32.totalorder %s1062_s0, %s1058_s14 }
  0x1a   : > { %s1376_s21 = smov (%p47_p5, %s45_s21), 0  ;;  %p230_p10 = scmp.eq.s32.totalorder %s798_s20, 1 }
  0x1b   : > { %p1179_p9 = por %p224_p7, %p223_p6  ;;  %s210_s24 = ssub.s32 %s1074_s17, %s1376_s21 }
  0x1c   : > { %p799_p11 = scmp.ge.s32.totalorder %s1078_s18, 1  ;;  %p211_p12 = scmp.eq.s32.totalorder %s210_s24, 0 }
  0x1d   : > { %p1186_p13 = por %p230_p10, %p229_p8  ;;  %p263_p0 = scmp.lt.s32.totalorder %s1078_s18, 3 }
  0x1e   : > { %s1192_s26 = scalar_select %p211_p12, %s1066_s15, %s213_s22  }
  0x1f   : > { %p1194_p1 = pnand %p799_p11, %p263_p0  ;;  %p1198_p2 = scmp.eq.s32.totalorder %s797_s19, 0 }
  0x20   : > { %s1367_s1 = sld [smem:[#allocation15_spill]] }
  0x21   : > { %p857_p3 = pneg %p1194_p1 }
  0x23   : > { %p858_p4 = pnand %p1198_p2, %p857_p3 }
  0x25   : > { %p949_p6 = pneg %p858_p4 }
  0x26   : > { %s276_s10 = sshll.u32 %s1367_s1, 4  ;;  %s277_s10 = int_to_ptr.vmem [resolvable:$true] %s276_s10 }
  0x27   : > { %s947_s11 = scalar_lea.vmem %s277_s10, 16  ;;  %p955_p10 = scmp.lt.s32.totalorder %s277_s10, %s277_s10 }
  0x28   : > { %p948_p5 = scmp.ne.s32.totalorder %s277_s10, %s947_s11  ;;  %p956_p11 = scmp.lt.s32.totalorder %s947_s11, %s947_s11 }
  0x2a   : > { %p950_p7 = pnand %p949_p6, %p948_p5  ;;  %p957_p12 = por %p956_p11, %p955_p10 }
  0x2c   : > { %p951_p8 = pneg %p950_p7 }
  0x2e   : > { %p958_p0 = pnand %p957_p12, %p951_p8 }
  0x30   : > { %961 = shalt.err (!%p958_p0)
}
  0x31   : > { %s1081_s12 = smov [#allocation5]   ;;  %323 = sbr.rel (%p1194_p1) target bundleno = 862 (0x35e), region = 48 }
  0x32   : > { %860 = dma.vmem_to_smem (!%p858_p4), %s277_s10, 16, %s1081_s12, [#allocation7]  }
  0x38   : > { %1045 = dma.done.wait (%p1198_p2), [#allocation7], 16  }
  0x39   : > { %1047 = vsyncadd (%p1198_p2), [#allocation7], 4294967280 }
  0x3a   : > { %329 = sfence }
  0x3b   : > { %p374_p3 = scmp.lt.s32.totalorder %s1070_s16, 1  ;;  %vm394_vm0 = vcmask 261120   ;;  %vm404_vm1 = vcmask 254976   ;;  %v1082_v31 = vmov 0.0   ;;  %vm1083_vm2 = vmmov 0   ;;  %s423_s27 = sld [smem:[#allocation5]] }
  0x3c   : > { %835 = vmatprep.subr.bf16.mxu0 %v1082_v31  ;;  %395 = vst.msk [vmem:[#allocation2] sm:$0xff] %vm394_vm0, %v1082_v31  ;;  %841 = vmatprep.subr.bf16.mxu1 %v1082_v31  ;;  %s810_s28 = sld [smem:[#allocation5 + $0x1]]  ;;  %v491_v52 = vlaneseq  ;;  %v811_v58 = vld [vmem:[%s1353_s3] ss:$0 sm:$0xff]  ;;  %vm507_vm4 = vcmask 1044480   ;;  %vm503_vm5 = vcmask 80896  }
  0x3d   : > { %s1217_s13 = scalar_select %p374_p3, %s1070_s16, 1  ;;  %837 = vmatprep.mubr.msk.bf16.mxu0 %vm1083_vm2, %v1082_v31  ;;  %845 = vmatprep.mubr.msk.bf16.mxu1 %vm1083_vm2, %v1082_v31 }
  0x3e   : > { %v492_v61 = vshrl.u32 %v491_v52, 7  ;;  %s1257_s29 = sand.u32 1, %s1062_s0   ;;  %s1361_s11 = sshll.u32 %s1070_s16, 7 }
  0x3f   : > { %s828_s19 = sshll.u32 %s1217_s13, 4  ;;  %s388_s10 = scalar_lea.vmem %s1355_s5, %s1217_s13 }
  0x40   : > { %s381_s24 = scalar_lea.vmem %s1352_s2, %s828_s19  ;;  %v813_v62 = vld [vmem:[%s388_s10] ss:$0 sm:$0xff]  ;;  %s1249_s13 = sld [smem:[#allocation4 + %s1070_s16]] }
  0x41   : > { %v396_v0 = vld [vmem:[%s381_s24] ss:$8 sps:$4 sm:$0xff]   ;;  %v397_v1 = vld [vmem:[%s381_s24 + $0x4] sm:$0x1]  ;;  %v809_v2 = vld [vmem:[%s381_s24 + $0xc] sm:$0x1]  ;;  %v428_v45 = vstv %s423_s27  ;;  %vm497_vm3 = vcmp.eq.s32.totalorder %v492_v61, %v813_v62  ;;  %s1271_s20 = scalar_lea.hbm %s1358_s8, %s1361_s11 }
  0x42   : > { %v398_v3 = vunpack.c.l.bf16 %v396_v0  ;;  %v438_v4 = vunpack.c.h.bf16 %v396_v0  ;;  %v399_v5 = vunpack.c.l.bf16 %v397_v1  ;;  %v439_v6 = vunpack.c.l.bf16 %v809_v2  ;;  %v812_v1 = vld [vmem:[%s1354_s4] ss:$0 sm:$0xff]  ;;  %s1360_s30 = sshll.u32 %s1257_s29, 3  ;;  %s634_s24 = scalar_lea.sflag [#allocation6], %s1257_s29 }
  0x43   : > { %v465_v46 = vstv %s810_s28  ;;  %s365_s10 = scalar_lea.vmem [#allocation8], %s1360_s30 }
  0x44   : > { %v401_v7 = vsel %vm394_vm0, %v398_v3, 0.0  ;;  %v440_v8 = vsel %vm394_vm0, %v438_v4, 0.0  ;;  %v405_v9 = vsel %vm404_vm1, %v399_v5, 0.0  ;;  %v443_v10 = vsel %vm404_vm1, %v439_v6, 0.0 }
  0x45   : > { %402 = vadd.xlane.f32.xlu0 %v401_v7  ;;  %441 = vadd.xlane.f32.xlu1 %v440_v8 }
  0x46   : > { %s829_s22 = sshll.u32 %s1249_s13, 4 }
  0x47   : > { %s562_s28 = scalar_lea.vmem %s1356_s6, %s829_s22  ;;  %s652_s22 = sshll.u32 %s365_s10, 4  ;;  %s653_s22 = int_to_ptr.vmem [resolvable:$true] %s652_s22 }
  0x48   : > { %s962_s27 = scalar_lea.vmem %s653_s22, 128 }
  0x49   : > { %406 = vadd.xlane.f32.xlu0 %v405_v9  ;;  %444 = vadd.xlane.f32.xlu1 %v443_v10  ;;  %v923_v9 = vld [vmem:[%s562_s28] sm:$0xff]   ;;  %v924_v10 = vld [vmem:[%s562_s28 + $0x8] sm:$0xff]   ;;  %p963_p1 = scmp.ne.s32.totalorder %s653_s22, %s962_s27  ;;  %s1084_s28 = smov [#allocation8]  }
  0x4a   : > { %842 = vmatpush3.bf16.msra.mxu1 %v923_v9  ;;  %s966_s30 = sshll.u32 %s1084_s28, 4  ;;  %s967_s30 = int_to_ptr.vmem [resolvable:$false] %s966_s30 }
  0x4b   : > { %843 = vmatprep.subr.bf16.mxu1 %v1082_v31  ;;  %p964_p2 = pnand %p963_p1, %p1179_p9  ;;  %s968_s1 = scalar_lea.vmem %s967_s30, 256 }
  0x4c   : > { %p969_p5 = scmp.lt.s32.totalorder %s653_s22, %s967_s30  ;;  %p970_p6 = scmp.lt.s32.totalorder %s968_s1, %s962_s27 }
  0x4d   : > { %p965_p4 = pneg %p964_p2 }
  0x4e   : > { %844 = vmatpush3.bf16.msra.mxu1 %v924_v10  ;;  %p971_p7 = por %p970_p6, %p969_p5 }
  0x50   : > { %p972_p8 = pnand %p971_p7, %p965_p4 }
  0xd2   : > { %v403_v11 = vpop.xlane.xlu0 %402  ;;  %v442_v12 = vpop.xlane.xlu1 %441 }
  0xd3   : > { %v409_v13 = vmul.f32 0.03125, %v403_v11  ;;  %v446_v14 = vmul.f32 0.03125, %v442_v12  ;;  %v501_v11 = vld [vmem:[#allocation2] sm:$0xff] }
  0xd5   : > { %v411_v15 = vsub.f32 %v398_v3, %v409_v13  ;;  %v448_v16 = vsub.f32 %v438_v4, %v446_v14 }
  0xd6   : > { %v407_v17 = vpop.xlane.xlu0 %406  ;;  %v445_v18 = vpop.xlane.xlu1 %444 }
  0xd7   : > { %v410_v19 = vmul.f32 0.03125, %v407_v17  ;;  %v447_v20 = vmul.f32 0.03125, %v445_v18  ;;  %v413_v21 = vmul.f32 %v411_v15, %v411_v15  ;;  %v450_v22 = vmul.f32 %v448_v16, %v448_v16 }
  0xd9   : > { %v412_v23 = vsub.f32 %v399_v5, %v410_v19  ;;  %v449_v24 = vsub.f32 %v439_v6, %v447_v20  ;;  %v415_v25 = vsel %vm394_vm0, %v413_v21, 0.0  ;;  %v452_v26 = vsel %vm394_vm0, %v450_v22, 0.0 }
  0xda   : > { %416 = vadd.xlane.f32.xlu0 %v415_v25  ;;  %v814_v5 = vsel %vm497_vm3, 1.0, %v1082_v31 }
  0xdb   : > { %v414_v27 = vmul.f32 %v412_v23, %v412_v23  ;;  %v451_v28 = vmul.f32 %v449_v24, %v449_v24  ;;  %v500_v8 = vpack.c.bf16 %v814_v5, %v814_v5 }
  0xdd   : > { %v418_v29 = vsel %vm404_vm1, %v414_v27, 0.0  ;;  %v455_v30 = vsel %vm404_vm1, %v451_v28, 0.0 }
  0xde   : > { %453 = vadd.xlane.f32.xlu0 %v452_v26  ;;  %419 = vadd.xlane.f32.xlu1 %v418_v29 }
  0xe2   : > { %456 = vadd.xlane.f32.xlu1 %v455_v30 }
 0x167   : > { %v417_v32 = vpop.xlane.xlu0 %416 }
 0x168   : > { %v421_v33 = vmul.f32 0.03125, %v417_v32 }
 0x16a   : > { %v424_v34 = vadd.f32 1e-05, %v421_v33 }
 0x16b   : > { %v420_v35 = vpop.xlane.xlu1 %419  ;;  %v454_v36 = vpop.xlane.xlu0 %453 }
 0x16c   : > { %v422_v37 = vmul.f32 0.03125, %v420_v35  ;;  %v458_v38 = vmul.f32 0.03125, %v454_v36  ;;  %925 = vrsqrt.f32 %v424_v34 }
 0x16e   : > { %v425_v39 = vadd.f32 1e-05, %v422_v37  ;;  %v461_v40 = vadd.f32 1e-05, %v458_v38 }
 0x16f   : > { %v457_v41 = vpop.xlane.xlu1 %456 }
 0x170   : > { %927 = vrsqrt.f32 %v425_v39  ;;  %v459_v42 = vmul.f32 0.03125, %v457_v41 }
 0x171   : > { %929 = vrsqrt.f32 %v461_v40 }
 0x172   : > { %v462_v43 = vadd.f32 1e-05, %v459_v42 }
 0x174   : > { %931 = vrsqrt.f32 %v462_v43 }
 0x176   : > { %v926_v44 = vpop.eup %925 }
 0x177   : > { %v429_v48 = vmul.f32 %v926_v44, %v428_v45 }
 0x179   : > { %v431_v54 = vmul.f32 %v429_v48, %v411_v15 }
 0x17a   : > { %v928_v47 = vpop.eup %927 }
 0x17b   : > { %v930_v49 = vpop.eup %929  ;;  %v430_v51 = vmul.f32 %v928_v47, %v428_v45 }
 0x17c   : > { %v466_v50 = vmul.f32 %v930_v49, %v465_v46 }
 0x17d   : > { %v432_v59 = vmul.f32 %v430_v51, %v412_v23 }
 0x17e   : > { %v932_v53 = vpop.eup %931  ;;  %v468_v55 = vmul.f32 %v466_v50, %v448_v16 }
 0x17f   : > { %v467_v56 = vmul.f32 %v932_v53, %v465_v46 }
 0x180   : > { %v470_v57 = vadd.f32 %v468_v55, %v431_v54 }
 0x181   : > { %v469_v60 = vmul.f32 %v467_v56, %v449_v24 }
 0x182   : > { %v479_v0 = vmul.f32 %v811_v58, %v470_v57 }
 0x183   : > { %v471_v63 = vadd.f32 %v469_v60, %v432_v59 }
 0x184   : > { %v488_v3 = vadd.f32 %v812_v1, %v479_v0 }
 0x185   : > { %v480_v2 = vmul.f32 %v811_v58, %v471_v63 }
 0x187   : > { %v489_v4 = vadd.f32 %v812_v1, %v480_v2 }
 0x189   : > { %v502_v6 = vpack.c.bf16 %v489_v4, %v488_v3 }
 0x18b   : > { %v509_v7 = vsel %vm507_vm4, %v502_v6, 0 }
 0x18c   : > { %836 = vmatpush3.bf16.msra.mxu0 %v509_v7 }
 0x18f   : > { %838 = vmatmul.mubr.msk.bf16.vlgmr.msra.gmra.mrb[0].mxu0 %vm503_vm5, %v500_v8 }
 0x262   : > { %v545_v12 = vpop.f32.mrb[0].mxu0 }
 0x263   : > { %v551_v13 = vadd.f32 %v545_v12, %v501_v11  ;;  %v839_v14 = vpop.f32.mrb[1].mxu0 }
 0x264   : > { %v548_v15 = vpop.f32.mrb[2].mxu0 }
 0x265   : > { %552 = vst.msk [vmem:[#allocation2] sm:$0xff] %vm394_vm0, %v551_v13  ;;  %v840_v16 = vpop.f32.mrb[3].mxu0 }
 0x26c   : > { %v556_v17 = vld [vmem:[#allocation2] sm:$0xff] }
 0x26d   : > { %v559_v18 = vpack.c.bf16 %v556_v17, %v556_v17  ;;  %557 = vst.msk [vmem:[%s365_s10] sm:$0xff] %vm394_vm0, %v556_v17 }
 0x26f   : > { %846 = vmatmul.mubr.msk.bf16.vlgmr.msra.gmra.mrb[0].mxu1 %vm394_vm0, %v559_v18 }
 0x270   : > { %975 = shalt.err (!%p972_p8)
}
 0x271   : > { %s976_s10 = scalar_lea.hbm %s1271_s20, 128  ;;  %s980_s28 = scalar_lea.hbm %s1358_s8, 256 }
 0x272   : > { %p977_p10 = scmp.ne.s32.totalorder %s1271_s20, %s976_s10  ;;  %p981_p0 = scmp.lt.u32.totalorder %s1271_s20, %s1358_s8 }
 0x273   : > { %p982_p3 = scmp.lt.u32.totalorder %s980_s28, %s976_s10  ;;  %p984_p2 = scmp.lt.u32.totalorder %s976_s10, %s1271_s20 }
 0x274   : > { %p978_p11 = pnand %p977_p10, %p1179_p9 }
 0x275   : > { %p983_p1 = por %p982_p3, %p981_p0 }
 0x276   : > { %p979_p12 = pneg %p978_p11 }
 0x277   : > { %p985_p4 = por %p984_p2, %p983_p1 }
 0x279   : > { %p986_p5 = pnand %p985_p4, %p979_p12 }
 0x27b   : > { %989 = shalt.err (!%p986_p5)
}
 0x27c   : > { %853 = dma.vmem_to_hbm [thread:$0]  (%p1179_p9), %s653_s22, 128, %s1271_s20, %s634_s24   ;;  %vm631_vm6 = vcmask 523264  }
 0x27d   : > { %s567_s12 = scalar_lea.vmem %s1357_s7, %s1249_s13  ;;  %s1368_s11 = sshll.u32 %s1257_s29, 3 }
 0x27e   : > { %v818_v19 = vld [vmem:[%s567_s12] ss:$0 sm:$0xff]  ;;  %s372_s10 = scalar_lea.vmem [#allocation9], %s1368_s11  ;;  %s1369_s28 = sshll.u32 %s1070_s16, 7 }
 0x27f   : > { %s665_s19 = sshll.u32 %s372_s10, 4  ;;  %s1302_s22 = scalar_lea.hbm %s1359_s9, %s1369_s28  ;;  %s1304_s19 = int_to_ptr.vmem [resolvable:$true] %s665_s19 }
 0x280   : > { %s639_s13 = scalar_lea.sflag [#allocation10], %s1257_s29  ;;  %s990_s24 = scalar_lea.vmem %s1304_s19, 128 }
 0x281   : > { %p991_p6 = scmp.ne.s32.totalorder %s1304_s19, %s990_s24  ;;  %s1085_s1 = smov [#allocation9]  }
 0x282   : > { %s994_s16 = sshll.u32 %s1085_s1, 4  ;;  %s995_s16 = int_to_ptr.vmem [resolvable:$false] %s994_s16 }
 0x283   : > { %p992_p7 = pnand %p991_p6, %p1179_p9  ;;  %s996_s27 = scalar_lea.vmem %s995_s16, 256 }
 0x284   : > { %p997_p10 = scmp.lt.s32.totalorder %s1304_s19, %s995_s16  ;;  %p998_p11 = scmp.lt.s32.totalorder %s996_s27, %s990_s24 }
 0x285   : > { %p993_p8 = pneg %p992_p7 }
 0x286   : > { %p999_p12 = por %p998_p11, %p997_p10 }
 0x288   : > { %p1000_p0 = pnand %p999_p12, %p993_p8 }
 0x342   : > { %v624_v20 = vpop.f32.mrb[0].mxu1 }
 0x343   : > { %v625_v21 = vadd.f32 %v818_v19, %v624_v20  ;;  %v847_v22 = vpop.f32.mrb[1].mxu1 }
 0x344   : > { %v627_v23 = vpop.f32.mrb[2].mxu1 }
 0x345   : > { %933 = vtanh.f32 %v625_v21  ;;  %v848_v24 = vpop.f32.mrb[3].mxu1 }
 0x34f   : > { %v934_v25 = vpop.eup %933 }
 0x350   : > { %632 = vst.msk [vmem:[%s372_s10] sm:$0xff] %vm631_vm6, %v934_v25 }
 0x351   : > { %1003 = shalt.err (!%p1000_p0)
}
 0x352   : > { %s1004_s29 = scalar_lea.hbm %s1302_s22, 128  ;;  %s1008_s10 = scalar_lea.hbm %s1359_s9, 256 }
 0x353   : > { %p1005_p3 = scmp.ne.s32.totalorder %s1302_s22, %s1004_s29  ;;  %p1009_p4 = scmp.lt.u32.totalorder %s1302_s22, %s1359_s9 }
 0x354   : > { %p1010_p5 = scmp.lt.u32.totalorder %s1008_s10, %s1004_s29  ;;  %p1012_p7 = scmp.lt.u32.totalorder %s1004_s29, %s1302_s22 }
 0x355   : > { %p1006_p1 = pnand %p1005_p3, %p1179_p9 }
 0x356   : > { %p1011_p6 = por %p1010_p5, %p1009_p4 }
 0x357   : > { %p1007_p2 = pneg %p1006_p1 }
 0x358   : > { %p1013_p8 = por %p1012_p7, %p1011_p6 }
 0x35a   : > { %p1014_p10 = pnand %p1013_p8, %p1007_p2 }
 0x35c   : > { %1017 = shalt.err (!%p1014_p10)
}
 0x35d   : > { %854 = dma.vmem_to_hbm [thread:$0]  (%p1179_p9), %s1304_s19, 128, %s1302_s22, %s639_s13  }
 0x35e PF: > { %p870_p11 = scmp.ge.s32.totalorder %s1078_s18, 2  ;;  %s677_s20 = sand.u32 1, %s1058_s14  }
 0x35f   : > { %s678_s24 = scalar_lea.sflag [#allocation6], %s677_s20 }
 0x360   : > { %p862_p12 = pnand %p870_p11, %p1186_p13 }
 0x362   : > { %1049 = dma.done.wait (!%p862_p12), %s678_s24, 128  }
 0x363   : > { %1051 = vsyncadd (!%p862_p12), %s678_s24, 4294967168  ;;  %s687_s1 = scalar_lea.sflag [#allocation10], %s677_s20 }
 0x364   : > { %1053 = dma.done.wait (!%p862_p12), %s687_s1, 128  }
 0x365   : > { %1055 = vsyncadd (!%p862_p12), %s687_s1, 4294967168  ;;  %s33_s18 = sadd.s32 1, %s1078_s18   ;;  %s1370_s14 = smov %s1062_s0 }
 0x366   : > { %p30_p0 = scmp.ge.s32.totalorder %s33_s18, 4   ;;  %s1371_s0 = smov %s1066_s15 }
 0x367   : > { %s1372_s15 = smov %s1192_s26  ;;  %s1373_s16 = smov %s1074_s17 }
 0x368   : > { %s1374_s17 = smov %s1376_s21  ;;  %32 = sbr.rel (!%p30_p0) target bundleno = 22 (0x16), region = 119 }
 0x36f   :  { %692 = vsyncpa [#allocation6], 1 }
 0x370   :  { %694 = vsyncpa [#allocation6 + $0x1], 1 }
 0x371   :  { %695 = vsyncpa [#allocation10], 1 }
 0x372   :  { %697 = vsyncpa [#allocation10 + $0x1], 1 }
 0x373   :  { %698 = vsyncpa [#allocation7], 1 }
 0x374   :  { %700 = vsyncpa [#allocation7 + $0x1], 1 }

</bundles_post_ra>
